<compile_context>
chip_gen: v7x
topology: tpu7x:2x2x1
jax: 0.10.0
libtpu: 0.0.40
codegen_flags: <defaults>
</compile_context>

<pallas_src>
import functools

import jax
import jax.numpy as jnp
from jax import lax
from jax.experimental import pallas as pl
from jax.experimental.pallas import tpu as pltpu

LANES = 128
SUBLANES = 8


def _rmse_partial_kernel(y_ref, yp_ref, o_ref, *, chunk_rows, n_chunks,
                         blocks_per_core, nblocks, last_mask_rows):
    """Accumulates this core's partial sum of squared diffs into o_ref (8,128)."""
    c = pl.program_id(0)            # core split (parallel axis)
    i = pl.program_id(1)            # row-block within this core (arbitrary axis)
    blk = c * blocks_per_core + i   # logical (unclamped) block id

    @pl.when(i == 0)
    def _():
        o_ref[...] = jnp.zeros_like(o_ref)

    def chunk_sumsq(j, mask_rows):
        """(8,128) partial sum of squared diffs for row-chunk j of this block."""
        r = pl.multiple_of(j * chunk_rows, chunk_rows)
        d = (y_ref[pl.ds(r, chunk_rows), :].astype(jnp.float32)
             - yp_ref[pl.ds(r, chunk_rows), :].astype(jnp.float32))
        if mask_rows is not None:
            # Only the last logical block ever takes this path; mask the rows
            # past the array (Pallas OOB padding of the partial final tile).
            rows_in_blk = r + lax.broadcasted_iota(jnp.int32,
                                                   (chunk_rows, LANES), 0)
            d = jnp.where(rows_in_blk < mask_rows, d, jnp.float32(0.0))
        sq = d * d
        # (chunk_rows,128) -> (chunk_rows/8, 8, 128); leading-axis sum is pure
        # vreg-wise VPU adds (no cross-lane reduce inside the kernel).
        return jnp.sum(sq.reshape(chunk_rows // SUBLANES, SUBLANES, LANES),
                       axis=0)

    def accumulate(mask_rows):
        acc = lax.fori_loop(
            0, n_chunks,
            lambda j, a: a + chunk_sumsq(j, mask_rows),
            jnp.zeros((SUBLANES, LANES), jnp.float32),
            unroll=True)
        o_ref[...] += acc

    if last_mask_rows is None:
        # Every real block is fully valid; only skip clamped duplicate blocks.
        @pl.when(blk < nblocks)
        def _():
            accumulate(None)
    else:
        if nblocks > 1:
            @pl.when(blk < nblocks - 1)
            def _():
                accumulate(None)            # interior hot path: no masking

        @pl.when(blk == nblocks - 1)
        def _():
            accumulate(last_mask_rows)      # masked partial final block
    # blk > nblocks - 1 (clamped duplicate on an uneven core split): skipped.


def _default_num_core_splits():
    # v7x-style chips expose 2 TensorCores per chip and benefit from the
    # leading 'parallel' core-split axis; v5e/v6e are single-TC, so skip it.
    try:
        kind = jax.devices()[0].device_kind.lower()
    except Exception:
        return 2
    single_tc_tags = ("v5 lite", "v5e", "v5litepod", "v6 lite", "v6e")
    if any(t in kind for t in single_tc_tags):
        return 1
    return 2


def rmse_loss(y, y_pred, eps=1e-6, block_rows=4096, num_core_splits=None):
    """loss = sqrt(mean((y - y_pred)**2) + eps), matching torch RMSELoss."""
    assert y.shape == y_pred.shape
    assert block_rows >= 128 and block_rows % 128 == 0
    n = y.size
    assert n > 0
    if num_core_splits is None:
        num_core_splits = _default_num_core_splits()

    y_flat = y.reshape(-1)
    yp_flat = y_pred.reshape(-1)

    # Largest (8*128)-aligned prefix goes through the kernel; the < 1024-element
    # remainder is reduced with plain jnp on the tiny tail slice. No full-array
    # padding; when n % 1024 == 0 the reshape below is a zero-copy bitcast.
    vreg_elems = SUBLANES * LANES
    n_main = (n // vreg_elems) * vreg_elems
    tail_sumsq = jnp.float32(0.0)
    if n_main != n:
        ty = y_flat[n_main:].astype(jnp.float32)
        typ = yp_flat[n_main:].astype(jnp.float32)
        tail_sumsq = jnp.sum((ty - typ) * (ty - typ))

    if n_main == 0:
        return jnp.sqrt(tail_sumsq / jnp.float32(n) + jnp.float32(eps))

    if n_main == n:
        y2 = y_flat.reshape(-1, LANES)       # layout-preserving, zero-copy
        yp2 = yp_flat.reshape(-1, LANES)
    else:
        # Unaligned lane remainder: XLA materializes this prefix slice once.
        # TODO(synk): a memory_space=pl.ANY flat ref + manual masked last DMA
        # would make this path copy-free as well.
        y2 = y_flat[:n_main].reshape(-1, LANES)
        yp2 = yp_flat[:n_main].reshape(-1, LANES)

    rows = n_main // LANES                   # multiple of 8 by construction

    if rows >= block_rows:
        chunk_rows = 128                     # divides block_rows (asserted)
        nblocks = -(-rows // block_rows)
    else:
        block_rows = rows                    # single full-extent block
        chunk_rows = rows                    # multiple of 8
        nblocks = 1
    n_chunks = block_rows // chunk_rows

    valid_rows_last = rows - (nblocks - 1) * block_rows
    last_mask_rows = valid_rows_last if valid_rows_last < block_rows else None

    blocks_per_core = -(-nblocks // num_core_splits)

    def in_map(c, i):
        # Clamp so the auto-DMA never targets a block past the array; clamped
        # duplicates are skipped inside the kernel by the blk-vs-nblocks gates.
        return (jnp.minimum(c * blocks_per_core + i, nblocks - 1), 0)

    itemsize = max(jnp.dtype(y.dtype).itemsize, jnp.dtype(y_pred.dtype).itemsize)
    pipeline_vmem = 2 * 2 * block_rows * LANES * itemsize   # 2 inputs x 2 bufs
    vmem_limit = None
    if pipeline_vmem > (12 << 20):
        # Leave headroom, but never claim more than v7x's 64 MiB physical VMEM.
        vmem_limit = min(pipeline_vmem + (8 << 20), 56 << 20)

    partials = pl.pallas_call(
        functools.partial(
            _rmse_partial_kernel,
            chunk_rows=chunk_rows,
            n_chunks=n_chunks,
            blocks_per_core=blocks_per_core,
            nblocks=nblocks,
            last_mask_rows=last_mask_rows,
        ),
        out_shape=jax.ShapeDtypeStruct((num_core_splits * SUBLANES, LANES),
                                       jnp.float32),
        grid_spec=pltpu.PrefetchScalarGridSpec(
            num_scalar_prefetch=0,
            grid=(num_core_splits, blocks_per_core),
            in_specs=[
                pl.BlockSpec((block_rows, LANES), in_map),
                pl.BlockSpec((block_rows, LANES), in_map),
            ],
            # One resident (8,128) accumulator block per core, written back once.
            out_specs=pl.BlockSpec((SUBLANES, LANES), lambda c, i: (c, 0)),
        ),
        compiler_params=pltpu.CompilerParams(
            dimension_semantics=("parallel", "arbitrary"),
            vmem_limit_bytes=vmem_limit,
        ),
    )(y2, yp2)

    # Final cross-lane reduce, mean, eps and sqrt hoisted out of the kernel.
    # NOTE: f32 sequential accumulation; for N >~ 1e9 consider more partials.
    total = jnp.sum(partials) + tail_sumsq
    return jnp.sqrt(total / jnp.float32(n) + jnp.float32(eps))


if __name__ == "__main__":
    key = jax.random.PRNGKey(0)
    ks = jax.random.split(key, 10)

    def ref_rmse(a, b, eps=1e-6):
        a32 = a.astype(jnp.float32)
        b32 = b.astype(jnp.float32)
        return jnp.sqrt(jnp.mean((a32 - b32) ** 2) + eps)

    # 1) NCHW-style f32, size a multiple of 1024 -> fully zero-copy kernel path.
    y = jax.random.normal(ks[0], (2, 4, 16, 16), dtype=jnp.float32)
    yp = jax.random.normal(ks[1], (2, 4, 16, 16), dtype=jnp.float32)
    out = rmse_loss(y, yp)
    jax.block_until_ready(out)
    assert jnp.allclose(out, ref_rmse(y, yp), rtol=1e-5, atol=1e-6), (out, ref_rmse(y, yp))

    # 2) Tiny unaligned input (< 1024 elements) -> pure jnp tail path.
    y2 = jax.random.normal(ks[2], (3, 5, 7), dtype=jnp.float32)
    yp2 = jax.random.normal(ks[3], (3, 5, 7), dtype=jnp.float32)
    out2 = rmse_loss(y2, yp2)
    jax.block_until_ready(out2)
    assert jnp.allclose(out2, ref_rmse(y2, yp2), rtol=1e-5, atol=1e-6)

    # 3) Unaligned size > 1024 -> kernel prefix + jnp lane-remainder tail.
    y3 = jax.random.normal(ks[4], (7, 13, 23), dtype=jnp.float32)
    yp3 = jax.random.normal(ks[5], (7, 13, 23), dtype=jnp.float32)
    out3 = rmse_loss(y3, yp3)
    jax.block_until_ready(out3)
    assert jnp.allclose(out3, ref_rmse(y3, yp3), rtol=1e-5, atol=1e-6)

    # 4) Multi-block grid with a partial (masked) last block and an explicit
    #    2-way core split: exercises the unmasked interior fast path, the
    #    last-block row mask (Pallas OOB rows) and duplicate-block skipping.
    y4 = jax.random.normal(ks[6], (2, 4, 105, 105), dtype=jnp.float32)
    yp4 = jax.random.normal(ks[7], (2, 4, 105, 105), dtype=jnp.float32)
    out4 = rmse_loss(y4, yp4, block_rows=128, num_core_splits=2)
    jax.block_until_ready(out4)
    assert jnp.allclose(out4, ref_rmse(y4, yp4), rtol=1e-5, atol=1e-6)

    # 5) Native bf16 inputs (upcast in-kernel; halves HBM traffic vs f32 slabs).
    y5 = jax.random.normal(ks[8], (2, 16, 128), dtype=jnp.bfloat16)
    yp5 = jax.random.normal(ks[9], (2, 16, 128), dtype=jnp.bfloat16)
    out5 = rmse_loss(y5, yp5)
    jax.block_until_ready(out5)
    assert jnp.allclose(out5, ref_rmse(y5, yp5), rtol=1e-4, atol=1e-5)

    print("KERNEL_OK")
</pallas_src>

<mosaic_0001>
module attributes {stable_mosaic.version = 11 : i64} {
  func.func @_rmse_partial_kernel(%arg0: i32, %arg1: i32, %arg2: memref<16x128xf32, #tpu.memory_space<vmem>>, %arg3: memref<16x128xf32, #tpu.memory_space<vmem>>, %arg4: memref<8x128xf32, #tpu.memory_space<vmem>>) attributes {dimension_semantics = [#tpu.dimension_semantics<parallel>, #tpu.dimension_semantics<arbitrary>], iteration_bounds = array<i64: 2, 1>, scalar_prefetch = 0 : i64, scratch_operands = 0 : i64, tpu.core_type = #tpu.core_type<tc>, window_params = [{transform_indices = @transform_0, window_bounds = array<i64: 16, 128>}, {transform_indices = @transform_1, window_bounds = array<i64: 16, 128>}, {transform_indices = @transform_2, window_bounds = array<i64: 8, 128>}]} {
    %c1_i32 = arith.constant 1 : i32
    %0 = arith.muli %arg0, %c1_i32 : i32
    %1 = arith.addi %0, %arg1 : i32
    %c0_i32 = arith.constant 0 : i32
    %2 = arith.cmpi eq, %arg1, %c0_i32 : i32
    %3 = arith.extui %2 : i1 to i32
    %c0_i32_0 = arith.constant 0 : i32
    %4 = arith.cmpi ne, %3, %c0_i32_0 : i32
    scf.if %4 {
      %cst = arith.constant 0.000000e+00 : f32
      %8 = vector.broadcast %cst : f32 to vector<8x128xf32>
      %c0 = arith.constant 0 : index
      %c0_3 = arith.constant 0 : index
      %9 = vector.load %arg4[%c0, %c0_3] : memref<8x128xf32, #tpu.memory_space<vmem>>, vector<8x128xf32>
      tpu.vector_store %arg4[%c0, %c0_3], %8 {strides = array<i32>} : memref<8x128xf32, #tpu.memory_space<vmem>>, vector<8x128xf32>,
    } else {
    }
    %c1_i32_1 = arith.constant 1 : i32
    %5 = arith.cmpi slt, %1, %c1_i32_1 : i32
    %6 = arith.extui %5 : i1 to i32
    %c0_i32_2 = arith.constant 0 : i32
    %7 = arith.cmpi ne, %6, %c0_i32_2 : i32
    scf.if %7 {
      %cst = arith.constant 0.000000e+00 : f32
      %8 = vector.broadcast %cst : f32 to vector<8x128xf32>
      %c0_i32_3 = arith.constant 0 : i32
      %c16_i32 = arith.constant 16 : i32
      %9 = arith.muli %c0_i32_3, %c16_i32 : i32
      %10 = tpu.assume_multiple %9, 16 : i32
      %11 = arith.index_cast %10 : i32 to index
      %c0 = arith.constant 0 : index
      %12 = vector.load %arg2[%11, %c0] : memref<16x128xf32, #tpu.memory_space<vmem>>, vector<16x128xf32>
      %13 = arith.index_cast %10 : i32 to index
      %c0_4 = arith.constant 0 : index
      %14 = vector.load %arg3[%13, %c0_4] : memref<16x128xf32, #tpu.memory_space<vmem>>, vector<16x128xf32>
      %15 = arith.subf %12, %14 : vector<16x128xf32>
      %16 = arith.mulf %15, %15 : vector<16x128xf32>
      %17 = vector.shape_cast %16 : vector<16x128xf32> to vector<2x8x128xf32>
      %cst_5 = arith.constant dense<0.000000e+00> : vector<8x128xf32>
      %18 = vector.multi_reduction <add>, %17, %cst_5 [0] : vector<2x8x128xf32> to vector<8x128xf32>
      %19 = arith.addf %8, %18 : vector<8x128xf32>
      %c1_i32_6 = arith.constant 1 : i32
      %c0_7 = arith.constant 0 : index
      %c0_8 = arith.constant 0 : index
      %20 = vector.load %arg4[%c0_7, %c0_8] : memref<8x128xf32, #tpu.memory_space<vmem>>, vector<8x128xf32>
      %21 = arith.addf %20, %19 : vector<8x128xf32>
      %c0_9 = arith.constant 0 : index
      %c0_10 = arith.constant 0 : index
      %22 = vector.load %arg4[%c0_9, %c0_10] : memref<8x128xf32, #tpu.memory_space<vmem>>, vector<8x128xf32>
      tpu.vector_store %arg4[%c0_9, %c0_10], %21 {strides = array<i32>} : memref<8x128xf32, #tpu.memory_space<vmem>>, vector<8x128xf32>,
    } else {
    }
    return
  }
  func.func @transform_0(%arg0: i32, %arg1: i32) -> (i32, i32) {
    %c1_i32 = arith.constant 1 : i32
    %0 = arith.muli %arg0, %c1_i32 : i32
    %1 = arith.addi %0, %arg1 : i32
    %c0_i32 = arith.constant 0 : i32
    %2 = arith.minsi %1, %c0_i32 : i32
    %c0_i32_0 = arith.constant 0 : i32
    %c0_i32_1 = arith.constant 0 : i32
    return %2, %c0_i32_0 : i32, i32
  }
  func.func @transform_1(%arg0: i32, %arg1: i32) -> (i32, i32) {
    %c1_i32 = arith.constant 1 : i32
    %0 = arith.muli %arg0, %c1_i32 : i32
    %1 = arith.addi %0, %arg1 : i32
    %c0_i32 = arith.constant 0 : i32
    %2 = arith.minsi %1, %c0_i32 : i32
    %c0_i32_0 = arith.constant 0 : i32
    %c0_i32_1 = arith.constant 0 : i32
    return %2, %c0_i32_0 : i32, i32
  }
  func.func @transform_2(%arg0: i32, %arg1: i32) -> (i32, i32) {
    %c0_i32 = arith.constant 0 : i32
    %c0_i32_0 = arith.constant 0 : i32
    return %arg0, %c0_i32 : i32, i32
  }
}

</mosaic_0001>

<bundles_post_ra>
// kernel: tpu_custom_call.1
= control target key start
LH: loop header
LB: loop body
LE: loop exit
PB: predicated region body
PF: predicated region fallthrough
CT: control target
= control target key end

     0   :  { %7 = vsyncpa [#allocation3], 0  ;;  %s881_s0 = inlined_call_operand.hbm [shape: f32[16,128], index: 0, kind: input, shape index: {}]   ;;  %s882_s1 = inlined_call_operand.hbm [shape: f32[16,128], index: 1, kind: input, shape index: {}]   ;;  %s883_s2 = inlined_call_operand.hbm [shape: f32[16,128], index: 2, kind: output, shape index: {}]  }
   0x1   :  { %9 = vsyncpa [#allocation3 + $0x1], 0 }
   0x2   :  { %10 = vsyncpa [#allocation6], 0 }
   0x3   :  { %12 = vsyncpa [#allocation6 + $0x1], 0 }
   0x4   :  { %13 = vsyncpa [#allocation4], 0 }
   0x5   :  { %15 = vsyncpa [#allocation4 + $0x1], 0  ;;  %s683_s9 = smov 0   ;;  %s685_s10 = smov 0  }
   0x6   :  { %s687_s11 = smov 0   ;;  %s689_s12 = smov 0  }
   0x7   :  { %s691_s13 = smov 0   ;;  %s693_s14 = smov 0  }
   0x8   :  { %s695_s15 = smov 0   ;;  %s697_s16 = smov 0  }
   0x9 LB: > { %s378_s17 = sadd.s32 4294967295, %s660_s16   ;;  %s379_s18 = sadd.s32 4294967294, %s660_s16   ;;  %s660_s16 = sphi %s697_s16, %s21_s16   ;;  %s656_s15 = sphi %s695_s15, %s902_s15   ;;  %s652_s14 = sphi %s693_s14, %s901_s14   ;;  %s648_s13 = sphi %s691_s13, %s871_s13   ;;  %s644_s12 = sphi %s689_s12, %s900_s12   ;;  %s640_s11 = sphi %s687_s11, %s899_s11   ;;  %s636_s10 = sphi %s685_s10, %s898_s10   ;;  %s632_s9 = sphi %s683_s9, %s897_s9  }
   0xa   : > { %s33_s19 = sadd.s32 1, %s656_s15  ;;  %p629_p1 = scmp.ne.s32.totalorder %s648_s13, 0 }
   0xb   : > { %p35_p0 = scmp.ge.s32.totalorder %s33_s19, 2  ;;  %p54_p2 = scmp.eq.s32.totalorder %s660_s16, 0 }
   0xc   : > { %p59_p3 = scmp.ne.s32.totalorder %s648_s13, %s644_s12  ;;  %p60_p5 = scmp.eq.s32.totalorder %s378_s17, 0 }
   0xd   : > { %s904_s19 = smov (%p35_p0, %s33_s19), 0  ;;  %p729_p4 = por %p629_p1, %p54_p2 }
   0xe   : > { %p733_p6 = por %p60_p5, %p59_p3  ;;  %s101_s22 = ssub.s32 %s656_s15, %s904_s19 }
   0xf   : > { %p102_p7 = scmp.eq.s32.totalorder %s101_s22, 0  ;;  %s104_s23 = sadd.s32 1, %s640_s11 }
  0x10   : > { %s887_s21 = scalar_select %p733_p6, 1, 0 }
  0x11   : > { %s741_s24 = scalar_select %p102_p7, %s640_s11, %s104_s23  }
  0x12   : > { %p114_p8 = scmp.ne.s32.totalorder %s640_s11, %s636_s10  ;;  %p115_p9 = scmp.eq.s32.totalorder %s378_s17, 1 }
  0x13   : > { %p120_p10 = scmp.ne.s32.totalorder %s636_s10, %s632_s9  ;;  %p121_p11 = scmp.eq.s32.totalorder %s379_s18, 1 }
  0x14   : > { %p747_p12 = por %p115_p9, %p114_p8  ;;  %p416_p1 = scmp.lt.s32.totalorder %s660_s16, 2 }
  0x15   : > { %p752_p0 = por %p121_p11, %p120_p10  ;;  %s662_s27 = smov [#allocation2]  }
  0x16   : > { %s888_s25 = scalar_select %p747_p12, 1, 0 }
  0x17   : > { %s889_s26 = scalar_select %p752_p0, 1, 0 }
  0x18   : > { %s155_s28 = sshll.u32 %s662_s27, 4  ;;  %p759_p2 = pnand %p416_p1, %p729_p4  ;;  %s156_s28 = int_to_ptr.vmem [resolvable:$true] %s155_s28 }
  0x19   : > { %s493_s4 = scalar_lea.hbm %s881_s0, 256 }
  0x1a   : > { %p494_p3 = scmp.ne.s32.totalorder %s881_s0, %s493_s4  ;;  %p495_p5 = pneg %p759_p2 }
  0x1b   : > { %p500_p8 = scmp.lt.u32.totalorder %s493_s4, %s493_s4  ;;  %p502_p9 = scmp.lt.u32.totalorder %s493_s4, %s881_s0 }
  0x1c   : > { %p496_p7 = pnand %p495_p5, %p494_p3 }
  0x1d   : > { %p503_p10 = por %p502_p9, %p500_p8 }
  0x1e   : > { %p497_p4 = pneg %p496_p7 }
  0x20   : > { %p504_p11 = pnand %p503_p10, %p497_p4 }
  0x22   : > { %507 = shalt.err (!%p504_p11)
}
  0x23   : > { %s508_s12 = scalar_lea.vmem %s156_s28, 256  ;;  %s515_s17 = scalar_lea.vmem %s156_s28, 512 }
  0x24   : > { %p509_p1 = scmp.ne.s32.totalorder %s156_s28, %s508_s12  ;;  %p516_p12 = scmp.lt.s32.totalorder %s156_s28, %s156_s28 }
  0x25   : > { %p517_p6 = scmp.lt.s32.totalorder %s515_s17, %s508_s12 }
  0x26   : > { %p511_p13 = pnand %p509_p1, %p495_p5 }
  0x27   : > { %p518_p3 = por %p517_p6, %p516_p12 }
  0x28   : > { %p512_p0 = pneg %p511_p13 }
  0x2a   : > { %p519_p7 = pnand %p518_p3, %p512_p0 }
  0x2c   : > { %522 = shalt.err (!%p519_p7)
}
  0x2d   : > { %s663_s18 = smov 128   ;;  %s664_s20 = smov 8  }
  0x2e   : > { %408 = dma.hbm_to_vmem [thread:$0]  (!%p759_p2), %s881_s0, 256, %s156_s28, [#allocation3], %s663_s18, %s663_s18, %s664_s20  }
  0x2f   : > { %p388_p13 = scmp.ge.s32.totalorder %s660_s16, 1  ;;  %p187_p4 = scmp.lt.s32.totalorder %s660_s16, 3 }
  0x30   : > { %s665_s30 = smov [#allocation5]   ;;  %s523_s6 = scalar_lea.hbm %s882_s1, 256 }
  0x31   : > { %p790_p8 = pnand %p388_p13, %p187_p4  ;;  %s179_s3 = sshll.u32 %s665_s30, 4  ;;  %s180_s3 = int_to_ptr.vmem [resolvable:$true] %s179_s3 }
  0x32   : > { %p524_p6 = scmp.ne.s32.totalorder %s882_s1, %s523_s6  ;;  %p530_p9 = scmp.lt.u32.totalorder %s523_s6, %s523_s6 }
  0x33   : > { %s891_s27 = scalar_select %p790_p8, 1, 0 }
  0x34   : > { %p526_p12 = pnand %p524_p6, %p495_p5  ;;  %p532_p10 = scmp.lt.u32.totalorder %s523_s6, %s882_s1 }
  0x36   : > { %p527_p0 = pneg %p526_p12  ;;  %p533_p11 = por %p532_p10, %p530_p9 }
  0x38   : > { %p534_p1 = pnand %p533_p11, %p527_p0 }
  0x3a   : > { %537 = shalt.err (!%p534_p1)
}
  0x3b   : > { %s538_s17 = scalar_lea.vmem %s180_s3, 256  ;;  %s545_s22 = scalar_lea.vmem %s180_s3, 512 }
  0x3c   : > { %p539_p3 = scmp.ne.s32.totalorder %s180_s3, %s538_s17  ;;  %p546_p4 = scmp.lt.s32.totalorder %s180_s3, %s180_s3 }
  0x3d   : > { %p547_p8 = scmp.lt.s32.totalorder %s545_s22, %s538_s17 }
  0x3e   : > { %p541_p7 = pnand %p539_p3, %p495_p5 }
  0x3f   : > { %p548_p6 = por %p547_p8, %p546_p4 }
  0x40   : > { %p542_p13 = pneg %p541_p7 }
  0x42   : > { %p549_p12 = pnand %p548_p6, %p542_p13 }
  0x44   : > { %552 = shalt.err (!%p549_p12)
}
  0x45   : > { %411 = dma.hbm_to_vmem [thread:$0]  (!%p759_p2), %s882_s1, 256, %s180_s3, [#allocation6], %s663_s18, %s663_s18, %s664_s20  }
  0x46   : > { %p892_p0 = scmp.ne.s32.totalorder %s891_s27, 0 }
  0x47   : > { %s193_s4 = sand.u32 (!%p892_p0), 1, %s648_s13   ;;  %p893_p5 = scmp.ne.s32.totalorder (!%p892_p0), %s887_s21, 0 }
  0x48   : > { %191 = sbr.rel (%p892_p0) target bundleno = 121 (0x79), region = 28  ;;  %s389_s5 = sshll.u32 (!%p892_p0), %s193_s4, 4 }
  0x49   : > { %s194_s6 = scalar_lea.sflag (!%p892_p0), [#allocation3], %s193_s4  ;;  %s197_s7 = scalar_lea.vmem (!%p892_p0), [#allocation2], %s389_s5 }
  0x4f   : > { %618 = dma.done.wait (%p893_p5), %s194_s6, 256  }
  0x50   : > { %620 = vsyncadd (%p893_p5), %s194_s6, 4294967040  ;;  %s203_s29 = scalar_lea.sflag [#allocation6], %s193_s4  ;;  %s206_s8 = scalar_lea.vmem [#allocation5], %s389_s5 }
  0x51   : > { %622 = dma.done.wait (%p893_p5), %s203_s29, 256  }
  0x52   : > { %624 = vsyncadd (%p893_p5), %s203_s29, 4294967040  ;;  %s229_s18 = sand.u32 1, %s636_s10   ;;  %v666_v0 = vmov 0.0   ;;  %p392_p2 = scmp.ge.s32.totalorder %s652_s14, 1 }
  0x53   : > { %s391_s20 = sshll.u32 %s229_s18, 3  ;;  %v250_v1 = vld [vmem:[%s197_s7] sm:$0xff] (!%p392_p2)  ;;  %v251_v2 = vld [vmem:[%s197_s7 + $0x8] sm:$0xff] (!%p392_p2) }
  0x54   : > { %s231_s27 = scalar_lea.vmem [#allocation7], %s391_s20  ;;  %249 = sbr.rel (%p392_p2) target bundleno = 96 (0x60), region = 44  ;;  %v252_v3 = vld [vmem:[%s206_s8] sm:$0xff] (!%p392_p2)  ;;  %v253_v4 = vld [vmem:[%s206_s8 + $0x8] sm:$0xff] (!%p392_p2) }
  0x55   : > { %245 = vst [vmem:[%s231_s27] sm:$0xff] %v666_v0  ;;  %v254_v5 = vsub.f32 (!%p392_p2), %v250_v1, %v252_v3  ;;  %v255_v6 = vsub.f32 (!%p392_p2), %v251_v2, %v253_v4 }
  0x57   : > { %v256_v7 = vmul.f32 (!%p392_p2), %v254_v5, %v254_v5  ;;  %v257_v8 = vmul.f32 (!%p392_p2), %v255_v6, %v255_v6 }
  0x59   : > { %v258_v10 = vadd.f32 (!%p392_p2), %v257_v8, %v256_v7 }
  0x5c   : > { %v260_v9 = vld [vmem:[%s231_s27] sm:$0xff] }
  0x5d   : > { %v261_v11 = vadd.f32 %v260_v9, %v258_v10 }
  0x5f   : > { %262 = vst [vmem:[%s231_s27] sm:$0xff] %v261_v11 }
  0x60 PF: > { %s394_s21 = sshll.u32 %s652_s14, 7  ;;  %s277_s17 = sshll.u32 %s231_s27, 4  ;;  %s278_s17 = int_to_ptr.vmem [resolvable:$true] %s277_s17 }
  0x61   : > { %s834_s12 = scalar_lea.hbm %s883_s2, %s394_s21  ;;  %s264_s22 = scalar_lea.sflag [#allocation4], %s229_s18 }
  0x62   : > { %s553_s23 = scalar_lea.vmem %s278_s17, 128  ;;  %p894_p9 = scmp.ne.s32.totalorder %s888_s25, 0 }
  0x63   : > { %p554_p8 = scmp.ne.s32.totalorder %s278_s17, %s553_s23  ;;  %s667_s30 = smov [#allocation7]  }
  0x64   : > { %s557_s4 = sshll.u32 %s667_s30, 4  ;;  %s558_s4 = int_to_ptr.vmem [resolvable:$false] %s557_s4 }
  0x65   : > { %p555_p10 = pnand %p554_p8, %p894_p9  ;;  %s559_s5 = scalar_lea.vmem %s558_s4, 256 }
  0x66   : > { %p560_p1 = scmp.lt.s32.totalorder %s278_s17, %s558_s4  ;;  %p561_p3 = scmp.lt.s32.totalorder %s559_s5, %s553_s23 }
  0x67   : > { %p556_p11 = pneg %p555_p10 }
  0x68   : > { %p562_p7 = por %p561_p3, %p560_p1 }
  0x6a   : > { %p563_p13 = pnand %p562_p7, %p556_p11 }
  0x6c   : > { %566 = shalt.err (!%p563_p13)
}
  0x6d   : > { %s567_s14 = scalar_lea.hbm %s834_s12, 128  ;;  %s571_s29 = scalar_lea.hbm %s883_s2, 256 }
  0x6e   : > { %p568_p4 = scmp.ne.s32.totalorder %s834_s12, %s567_s14  ;;  %p572_p0 = scmp.lt.u32.totalorder %s834_s12, %s883_s2 }
  0x6f   : > { %p573_p5 = scmp.lt.u32.totalorder %s571_s29, %s567_s14  ;;  %p575_p8 = scmp.lt.u32.totalorder %s567_s14, %s834_s12 }
  0x70   : > { %p569_p6 = pnand %p568_p4, %p894_p9 }
  0x71   : > { %p574_p2 = por %p573_p5, %p572_p0 }
  0x72   : > { %p570_p12 = pneg %p569_p6 }
  0x73   : > { %p576_p10 = por %p575_p8, %p574_p2 }
  0x75   : > { %p577_p11 = pnand %p576_p10, %p570_p12 }
  0x77   : > { %580 = shalt.err (!%p577_p11)
}
  0x78   : > { %403 = dma.vmem_to_hbm [thread:$0]  (%p894_p9), %s278_s17, 128, %s834_s12, %s264_s22  }
  0x79 PF: > { %s289_s20 = sand.u32 1, %s632_s9   ;;  %p895_p1 = scmp.ne.s32.totalorder %s889_s26, 0 }
  0x7a   : > { %p896_p3 = scmp.ge.s32.totalorder %s660_s16, 2  ;;  %s290_s27 = scalar_lea.sflag [#allocation4], %s289_s20 }
  0x7c   : > { %p413_p7 = pnand %p896_p3, %p895_p1 }
  0x7e   : > { %626 = dma.done.wait (!%p413_p7), %s290_s27, 128  }
  0x7f   : > { %628 = vsyncadd (!%p413_p7), %s290_s27, 4294967168  ;;  %s21_s16 = sadd.s32 1, %s660_s16   ;;  %s897_s9 = smov %s636_s10 }
  0x80   : > { %p18_p13 = scmp.ge.s32.totalorder %s21_s16, 4   ;;  %s898_s10 = smov %s640_s11 }
  0x81   : > { %s899_s11 = smov %s741_s24  ;;  %s900_s12 = smov %s648_s13 }
  0x82   : > { %s871_s13 = smov 0   ;;  %s901_s14 = smov %s656_s15 }
  0x83   : > { %s902_s15 = smov %s904_s19  ;;  %20 = sbr.rel (!%p18_p13) target bundleno = 9 (0x9), region = 94 }
  0x8a   :  { %295 = vsyncpa [#allocation3], 1 }
  0x8b   :  { %297 = vsyncpa [#allocation3 + $0x1], 1 }
  0x8c   :  { %298 = vsyncpa [#allocation6], 1 }
  0x8d   :  { %300 = vsyncpa [#allocation6 + $0x1], 1 }
  0x8e   :  { %301 = vsyncpa [#allocation4], 1 }
  0x8f   :  { %303 = vsyncpa [#allocation4 + $0x1], 1 }

</bundles_post_ra>
